<compile_context>
chip_gen: v7x
topology: tpu7x:2x2x1
jax: 0.10.0
libtpu: 0.0.40
codegen_flags: <defaults>
</compile_context>

<pallas_src>
import functools

import jax
import jax.numpy as jnp
from jax.experimental import pallas as pl
from jax.experimental.pallas import tpu as pltpu

LEAKY_SLOPE = 0.2
BN_EPS = 1e-5
LANE = 128          # lane width: pad K / Cout to multiples of this
SUBLANE = 8         # sublane width: pad M / Cin to multiples of this
MAX_TM = 256        # rows per M-tile (multiple of 8)
VMEM_LIMIT_BYTES = 32 * 1024 * 1024


def _round_up(x, m):
    return (x + m - 1) // m * m


def _pad_last_dim(x, target):
    c = x.shape[-1]
    if c == target:
        return x
    pad = [(0, 0)] * (x.ndim - 1) + [(0, target - c)]
    return jnp.pad(x, pad)


def _tile_m(m):
    """(tile_rows, padded_rows): tile is a multiple of 8, <= MAX_TM, and divides padded_rows."""
    if m <= MAX_TM:
        tm = _round_up(m, SUBLANE)
        return tm, tm
    return MAX_TM, _round_up(m, MAX_TM)


def _compiler_params():
    return pltpu.CompilerParams(
        dimension_semantics=("parallel",),      # M-tiles are independent -> megacore sharding
        vmem_limit_bytes=VMEM_LIMIT_BYTES)


# ----------------------------- Pallas kernels -----------------------------

def _matmul_lrelu_kernel(p_ref, w_ref, o_ref):
    # (TM, Kp) bf16 @ (Kp, Cp) bf16 on the MXU with f32 accumulation; LeakyReLU on the VPU.
    y = jnp.dot(p_ref[...], w_ref[...], preferred_element_type=jnp.float32)
    o_ref[...] = jnp.where(y > 0, y, LEAKY_SLOPE * y)


def _matmul_stats_kernel(p_ref, w_ref, y_ref, stats_ref):
    # Conv matmul for this M-tile; also emit per-tile partial BN statistics
    # (row 0 = sum over rows, row 1 = sum of squares, rows 2..7 = zero padding).
    y = jnp.dot(p_ref[...], w_ref[...], preferred_element_type=jnp.float32)
    y_ref[...] = y
    stats_ref[...] = jnp.concatenate(
        [jnp.sum(y, axis=0, keepdims=True),
         jnp.sum(y * y, axis=0, keepdims=True),
         jnp.zeros((SUBLANE - 2, y.shape[1]), jnp.float32)], axis=0)


def _scale_shift_lrelu_kernel(y_ref, scale_ref, shift_ref, o_ref):
    # BN apply: (y - mean) * inv_std * gamma + beta folded into a single scale/shift, + LeakyReLU.
    y = y_ref[...] * scale_ref[...] + shift_ref[...]
    o_ref[...] = jnp.where(y > 0, y, LEAKY_SLOPE * y)


# ----------------------------- layer wrappers -----------------------------

def _fused_matmul_lrelu(patches, w_pad):
    """Tiled (M, Kp) @ (Kp, Cp) + LeakyReLU. Returns (M_pad, Cp) f32."""
    m, k = patches.shape
    kp, cp = w_pad.shape
    tm, m_pad = _tile_m(m)
    grid_n = m_pad // tm
    p = jnp.pad(patches.astype(jnp.bfloat16), ((0, m_pad - m), (0, kp - k)))
    return pl.pallas_call(
        _matmul_lrelu_kernel,
        out_shape=jax.ShapeDtypeStruct((m_pad, cp), jnp.float32),
        grid=(grid_n,),
        in_specs=[pl.BlockSpec((tm, kp), lambda i: (i, 0)),
                  pl.BlockSpec((kp, cp), lambda i: (0, 0))],
        out_specs=pl.BlockSpec((tm, cp), lambda i: (i, 0)),
        compiler_params=_compiler_params(),
    )(p, w_pad)


def _fused_conv_bn_lrelu(patches, w_pad, gamma, beta):
    """Tiled conv matmul + exact batch-stat BatchNorm + LeakyReLU. Returns (M_pad, Cp) f32."""
    m, k = patches.shape
    kp, cp = w_pad.shape
    tm, m_pad = _tile_m(m)
    grid_n = m_pad // tm
    p = jnp.pad(patches.astype(jnp.bfloat16), ((0, m_pad - m), (0, kp - k)))

    # Pass 1: tiled matmul; per-tile partial sums for the batch statistics.
    y_raw, part = pl.pallas_call(
        _matmul_stats_kernel,
        out_shape=(jax.ShapeDtypeStruct((m_pad, cp), jnp.float32),
                   jax.ShapeDtypeStruct((grid_n * SUBLANE, cp), jnp.float32)),
        grid=(grid_n,),
        in_specs=[pl.BlockSpec((tm, kp), lambda i: (i, 0)),
                  pl.BlockSpec((kp, cp), lambda i: (0, 0))],
        out_specs=(pl.BlockSpec((tm, cp), lambda i: (i, 0)),
                   pl.BlockSpec((SUBLANE, cp), lambda i: (i, 0))),
        compiler_params=_compiler_params(),
    )(p, w_pad)

    # Finalize batch stats over the TRUE M = N*Ho*Wo rows (zero-padded rows contribute 0).
    part = part.reshape(grid_n, SUBLANE, cp)
    s1 = jnp.sum(part[:, 0, :], axis=0)
    s2 = jnp.sum(part[:, 1, :], axis=0)
    inv_m = 1.0 / float(m)
    mean = s1 * inv_m
    var = jnp.maximum(s2 * inv_m - mean * mean, 0.0)        # biased variance (train-mode BN)
    inv_std = jax.lax.rsqrt(var + BN_EPS)
    gamma_p = _pad_last_dim(gamma, cp)
    beta_p = _pad_last_dim(beta, cp)
    scale = (gamma_p * inv_std).reshape(1, cp)
    shift = (beta_p - mean * gamma_p * inv_std).reshape(1, cp)

    # Pass 2: tiled normalize + affine + LeakyReLU.
    return pl.pallas_call(
        _scale_shift_lrelu_kernel,
        out_shape=jax.ShapeDtypeStruct((m_pad, cp), jnp.float32),
        grid=(grid_n,),
        in_specs=[pl.BlockSpec((tm, cp), lambda i: (i, 0)),
                  pl.BlockSpec((1, cp), lambda i: (0, 0)),
                  pl.BlockSpec((1, cp), lambda i: (0, 0))],
        out_specs=pl.BlockSpec((tm, cp), lambda i: (i, 0)),
        compiler_params=_compiler_params(),
    )(y_raw, scale, shift)


def im2col(x_nhwc, k, stride, pad):
    """Plain-JAX glue: k x k patches (stride, zero pad) -> (N*Ho*Wo, k*k*C), same jit region."""
    if pad:
        x_nhwc = jnp.pad(x_nhwc, ((0, 0), (pad, pad), (pad, pad), (0, 0)))
    N, H, W, C = x_nhwc.shape
    Ho = (H - k) // stride + 1
    Wo = (W - k) // stride + 1
    cols = []
    for i in range(k):
        for j in range(k):
            cols.append(x_nhwc[:, i:i + stride * Ho:stride, j:j + stride * Wo:stride, :])
    patches = jnp.stack(cols, axis=3)                       # (N, Ho, Wo, k*k, C)
    return patches.reshape(N * Ho * Wo, k * k * C), (N, Ho, Wo)


def conv_lrelu_layer(x_nhwc, w_pad, cout):
    cin_p = w_pad.shape[0] // 16
    patches, (N, Ho, Wo) = im2col(_pad_last_dim(x_nhwc, cin_p), 4, 2, 1)
    out = _fused_matmul_lrelu(patches, w_pad)
    return out[:N * Ho * Wo, :cout].reshape(N, Ho, Wo, cout)


def conv_bn_lrelu_layer(x_nhwc, w_pad, gamma, beta, cout):
    cin_p = w_pad.shape[0] // 16
    patches, (N, Ho, Wo) = im2col(_pad_last_dim(x_nhwc, cin_p), 4, 2, 1)
    out = _fused_conv_bn_lrelu(patches, w_pad, gamma, beta)
    return out[:N * Ho * Wo, :cout].reshape(N, Ho, Wo, cout)


# ----------------------------- params / forward -----------------------------

def _conv_weight_to_padded_matrix(w_oihw):
    """PyTorch (Cout, Cin, kh, kw) -> lane-dense (kh*kw*Cin_p, Cout_p) bf16 matching im2col order."""
    cout, cin, kh, kw = w_oihw.shape
    cin_p = _round_up(cin, SUBLANE)
    cout_p = _round_up(cout, LANE)
    w = jnp.transpose(w_oihw, (2, 3, 1, 0))                 # (kh, kw, cin, cout)
    w = jnp.pad(w, ((0, 0), (0, 0), (0, cin_p - cin), (0, cout_p - cout)))
    return w.reshape(kh * kw * cin_p, cout_p).astype(jnp.bfloat16)


def init_discriminator_params(key, numb_color_channels, ndf, number_of_layers):
    params = {}
    keys = jax.random.split(key, 3 * number_of_layers + 3)
    ki = iter(range(len(keys)))

    # Conv2d(C, ndf, 4, 2, 1, bias=False)
    w = 0.02 * jax.random.normal(keys[next(ki)],
                                 (ndf, numb_color_channels, 4, 4), jnp.float32)
    params["conv0_w"] = _conv_weight_to_padded_matrix(w)

    for i in range(number_of_layers):
        cin = ndf * 2 ** i
        cout = ndf * 2 ** (i + 1)
        w = 0.02 * jax.random.normal(keys[next(ki)], (cout, cin, 4, 4), jnp.float32)
        params[f"conv{i + 1}_w"] = _conv_weight_to_padded_matrix(w)
        params[f"bn{i + 1}_gamma"] = 1.0 + 0.1 * jax.random.normal(
            keys[next(ki)], (cout,), jnp.float32)
        params[f"bn{i + 1}_beta"] = 0.1 * jax.random.normal(
            keys[next(ki)], (cout,), jnp.float32)

    # Conv2d(ndf*2**L, 1, 4, 1, 0, bias=True) — kept unpadded (tiny, runs in plain JAX).
    cin = ndf * 2 ** number_of_layers
    w = 0.02 * jax.random.normal(keys[next(ki)], (1, cin, 4, 4), jnp.float32)
    params["convf_w"] = jnp.transpose(w, (2, 3, 1, 0)).reshape(-1, 1)
    params["convf_b"] = 0.1 * jax.random.normal(keys[next(ki)], (1,), jnp.float32)
    return params


def discriminator_forward(params, x_nchw, *, ndf, number_of_layers):
    x = jnp.transpose(x_nchw, (0, 2, 3, 1)).astype(jnp.float32)      # NCHW -> NHWC

    # Conv(C, ndf, 4, 2, 1, bias=False) + LeakyReLU(0.2): one fused, tiled Pallas kernel.
    x = conv_lrelu_layer(x, params["conv0_w"], ndf)

    # [Conv(4,2,1, bias=False) + BatchNorm2d(train) + LeakyReLU(0.2)] * number_of_layers
    for i in range(number_of_layers):
        cout = ndf * 2 ** (i + 1)
        x = conv_bn_lrelu_layer(x, params[f"conv{i + 1}_w"],
                                params[f"bn{i + 1}_gamma"], params[f"bn{i + 1}_beta"], cout)

    # Conv(ndf*2**L, 1, 4, 1, 0, bias=True) + Sigmoid: (N*Ho*Wo, 16*cin) @ (16*cin, 1) is
    # too small to amortize a pallas_call; done as plain JAX.
    patches, (N, Ho, Wo) = im2col(x, 4, 1, 0)
    logits = jnp.dot(patches, params["convf_w"]) + params["convf_b"]
    y = jax.nn.sigmoid(logits).reshape(N, Ho, Wo, 1)
    return jnp.transpose(y, (0, 3, 1, 2))                            # back to NCHW


if __name__ == "__main__":
    # Small config consistent with the module: number_of_layers=2 so a 32x32 input
    # shrinks 32 -> 16 -> 8 -> 4 -> (final 4x4 valid conv) -> 1x1.
    numb_color_channels = 3
    ndf = 8
    number_of_layers = 2
    batch = 2
    spatial = 32

    key = jax.random.PRNGKey(0)
    k_param, k_x = jax.random.split(key)
    params = init_discriminator_params(k_param, numb_color_channels, ndf, number_of_layers)
    x = jax.random.normal(k_x, (batch, numb_color_channels, spatial, spatial), jnp.float32)

    fwd = jax.jit(functools.partial(discriminator_forward,
                                    ndf=ndf, number_of_layers=number_of_layers))
    out = jax.block_until_ready(fwd(params, x))

    assert out.shape == (batch, 1, 1, 1), out.shape
    assert bool(jnp.all(jnp.isfinite(out)))
    assert bool(jnp.all((out >= 0.0) & (out <= 1.0)))   # sigmoid range
    print("KERNEL_OK")
</pallas_src>

<mosaic_0001>
module attributes {stable_mosaic.version = 11 : i64} {
  func.func @_matmul_lrelu_kernel(%arg0: i32, %arg1: memref<256x128xbf16, #tpu.memory_space<vmem>>, %arg2: memref<128x128xbf16, #tpu.memory_space<vmem>>, %arg3: memref<256x128xf32, #tpu.memory_space<vmem>>) attributes {dimension_semantics = [#tpu.dimension_semantics<parallel>], iteration_bounds = array<i64: 2>, scalar_prefetch = 0 : i64, scratch_operands = 0 : i64, tpu.core_type = #tpu.core_type<tc>, window_params = [{transform_indices = @transform_0, window_bounds = array<i64: 256, 128>}, {pipeline_mode = #tpu.pipeline_mode<synchronous>, transform_indices = @transform_1, window_bounds = array<i64: 128, 128>}, {transform_indices = @transform_2, window_bounds = array<i64: 256, 128>}]} {
    %c0 = arith.constant 0 : index
    %c0_0 = arith.constant 0 : index
    %0 = vector.load %arg1[%c0, %c0_0] : memref<256x128xbf16, #tpu.memory_space<vmem>>, vector<256x128xbf16>
    %c0_1 = arith.constant 0 : index
    %c0_2 = arith.constant 0 : index
    %1 = vector.load %arg2[%c0_1, %c0_2] : memref<128x128xbf16, #tpu.memory_space<vmem>>, vector<128x128xbf16>
    %cst = arith.constant dense<0.000000e+00> : vector<256x128xf32>
    %2 = tpu.matmul %0, %1, %cst {dimension_numbers = #tpu.dot_dimension_numbers<[1], [0], [0], [1], [0, 0, 1, 1], [], []>} : vector<256x128xbf16>, vector<128x128xbf16>, vector<256x128xf32> -> vector<256x128xf32>
    %cst_3 = arith.constant 0.000000e+00 : f32
    %3 = vector.broadcast %cst_3 : f32 to vector<256x128xf32>
    %4 = arith.cmpf ogt, %2, %3 : vector<256x128xf32>
    %cst_4 = arith.constant 2.000000e-01 : f32
    %5 = vector.broadcast %cst_4 : f32 to vector<256x128xf32>
    %6 = arith.mulf %5, %2 : vector<256x128xf32>
    %7 = arith.select %4, %2, %6 : vector<256x128xi1>, vector<256x128xf32>
    %c0_5 = arith.constant 0 : index
    %c0_6 = arith.constant 0 : index
    %8 = vector.load %arg3[%c0_5, %c0_6] : memref<256x128xf32, #tpu.memory_space<vmem>>, vector<256x128xf32>
    tpu.vector_store %arg3[%c0_5, %c0_6], %7 {strides = array<i32>} : memref<256x128xf32, #tpu.memory_space<vmem>>, vector<256x128xf32>,
    return
  }
  func.func @transform_0(%arg0: i32) -> (i32, i32) {
    %c0_i32 = arith.constant 0 : i32
    %c0_i32_0 = arith.constant 0 : i32
    return %arg0, %c0_i32 : i32, i32
  }
  func.func @transform_1(%arg0: i32) -> (i32, i32) {
    %c0_i32 = arith.constant 0 : i32
    %c0_i32_0 = arith.constant 0 : i32
    %c0_i32_1 = arith.constant 0 : i32
    return %c0_i32, %c0_i32_0 : i32, i32
  }
  func.func @transform_2(%arg0: i32) -> (i32, i32) {
    %c0_i32 = arith.constant 0 : i32
    %c0_i32_0 = arith.constant 0 : i32
    return %arg0, %c0_i32 : i32, i32
  }
}

module attributes {stable_mosaic.version = 11 : i64} {
  func.func @_matmul_stats_kernel(%arg0: i32, %arg1: memref<128x128xbf16, #tpu.memory_space<vmem>>, %arg2: memref<128x128xbf16, #tpu.memory_space<vmem>>, %arg3: memref<128x128xf32, #tpu.memory_space<vmem>>, %arg4: memref<8x128xf32, #tpu.memory_space<vmem>>) attributes {dimension_semantics = [#tpu.dimension_semantics<parallel>], iteration_bounds = array<i64: 1>, scalar_prefetch = 0 : i64, scratch_operands = 0 : i64, tpu.core_type = #tpu.core_type<tc>, window_params = [{transform_indices = @transform_0, window_bounds = array<i64: 128, 128>}, {pipeline_mode = #tpu.pipeline_mode<synchronous>, transform_indices = @transform_1, window_bounds = array<i64: 128, 128>}, {transform_indices = @transform_2, window_bounds = array<i64: 128, 128>}, {transform_indices = @transform_3, window_bounds = array<i64: 8, 128>}]} {
    %c0 = arith.constant 0 : index
    %c0_0 = arith.constant 0 : index
    %0 = vector.load %arg1[%c0, %c0_0] : memref<128x128xbf16, #tpu.memory_space<vmem>>, vector<128x128xbf16>
    %c0_1 = arith.constant 0 : index
    %c0_2 = arith.constant 0 : index
    %1 = vector.load %arg2[%c0_1, %c0_2] : memref<128x128xbf16, #tpu.memory_space<vmem>>, vector<128x128xbf16>
    %cst = arith.constant dense<0.000000e+00> : vector<128x128xf32>
    %2 = tpu.matmul %0, %1, %cst {dimension_numbers = #tpu.dot_dimension_numbers<[1], [0], [0], [1], [0, 0, 1, 1], [], []>} : vector<128x128xbf16>, vector<128x128xbf16>, vector<128x128xf32> -> vector<128x128xf32>
    %c0_3 = arith.constant 0 : index
    %c0_4 = arith.constant 0 : index
    %3 = vector.load %arg3[%c0_3, %c0_4] : memref<128x128xf32, #tpu.memory_space<vmem>>, vector<128x128xf32>
    tpu.vector_store %arg3[%c0_3, %c0_4], %2 {strides = array<i32>} : memref<128x128xf32, #tpu.memory_space<vmem>>, vector<128x128xf32>,
    %cst_5 = arith.constant dense<0.000000e+00> : vector<128xf32>
    %4 = vector.multi_reduction <add>, %2, %cst_5 [0] : vector<128x128xf32> to vector<128xf32>
    %5 = vector.shape_cast %4 : vector<128xf32> to vector<1x128xf32>
    %6 = arith.mulf %2, %2 : vector<128x128xf32>
    %cst_6 = arith.constant dense<0.000000e+00> : vector<128xf32>
    %7 = vector.multi_reduction <add>, %6, %cst_6 [0] : vector<128x128xf32> to vector<128xf32>
    %8 = vector.shape_cast %7 : vector<128xf32> to vector<1x128xf32>
    %cst_7 = arith.constant 0.000000e+00 : f32
    %9 = vector.broadcast %cst_7 : f32 to vector<6x128xf32>
    %10 = tpu.concatenate %5, %8, %9 in 0 : vector<1x128xf32>, vector<1x128xf32>, vector<6x128xf32> -> vector<8x128xf32>
    %c0_8 = arith.constant 0 : index
    %c0_9 = arith.constant 0 : index
    %11 = vector.load %arg4[%c0_8, %c0_9] : memref<8x128xf32, #tpu.memory_space<vmem>>, vector<8x128xf32>
    tpu.vector_store %arg4[%c0_8, %c0_9], %10 {strides = array<i32>} : memref<8x128xf32, #tpu.memory_space<vmem>>, vector<8x128xf32>,
    return
  }
  func.func @transform_0(%arg0: i32) -> (i32, i32) {
    %c0_i32 = arith.constant 0 : i32
    %c0_i32_0 = arith.constant 0 : i32
    return %arg0, %c0_i32 : i32, i32
  }
  func.func @transform_1(%arg0: i32) -> (i32, i32) {
    %c0_i32 = arith.constant 0 : i32
    %c0_i32_0 = arith.constant 0 : i32
    %c0_i32_1 = arith.constant 0 : i32
    return %c0_i32, %c0_i32_0 : i32, i32
  }
  func.func @transform_2(%arg0: i32) -> (i32, i32) {
    %c0_i32 = arith.constant 0 : i32
    %c0_i32_0 = arith.constant 0 : i32
    return %arg0, %c0_i32 : i32, i32
  }
  func.func @transform_3(%arg0: i32) -> (i32, i32) {
    %c0_i32 = arith.constant 0 : i32
    %c0_i32_0 = arith.constant 0 : i32
    return %arg0, %c0_i32 : i32, i32
  }
}

module attributes {stable_mosaic.version = 11 : i64} {
  func.func @_scale_shift_lrelu_kernel(%arg0: i32, %arg1: memref<128x128xf32, #tpu.memory_space<vmem>>, %arg2: memref<1x128xf32, #tpu.memory_space<vmem>>, %arg3: memref<1x128xf32, #tpu.memory_space<vmem>>, %arg4: memref<128x128xf32, #tpu.memory_space<vmem>>) attributes {dimension_semantics = [#tpu.dimension_semantics<parallel>], iteration_bounds = array<i64: 1>, scalar_prefetch = 0 : i64, scratch_operands = 0 : i64, tpu.core_type = #tpu.core_type<tc>, window_params = [{transform_indices = @transform_0, window_bounds = array<i64: 128, 128>}, {pipeline_mode = #tpu.pipeline_mode<synchronous>, transform_indices = @transform_1, window_bounds = array<i64: 1, 128>}, {pipeline_mode = #tpu.pipeline_mode<synchronous>, transform_indices = @transform_2, window_bounds = array<i64: 1, 128>}, {transform_indices = @transform_3, window_bounds = array<i64: 128, 128>}]} {
    %c0 = arith.constant 0 : index
    %c0_0 = arith.constant 0 : index
    %0 = vector.load %arg1[%c0, %c0_0] : memref<128x128xf32, #tpu.memory_space<vmem>>, vector<128x128xf32>
    %c0_1 = arith.constant 0 : index
    %c0_2 = arith.constant 0 : index
    %1 = vector.load %arg2[%c0_1, %c0_2] : memref<1x128xf32, #tpu.memory_space<vmem>>, vector<1x128xf32>
    %2 = vector.broadcast %1 : vector<1x128xf32> to vector<128x128xf32>
    %3 = arith.mulf %0, %2 : vector<128x128xf32>
    %c0_3 = arith.constant 0 : index
    %c0_4 = arith.constant 0 : index
    %4 = vector.load %arg3[%c0_3, %c0_4] : memref<1x128xf32, #tpu.memory_space<vmem>>, vector<1x128xf32>
    %5 = vector.broadcast %4 : vector<1x128xf32> to vector<128x128xf32>
    %6 = arith.addf %3, %5 : vector<128x128xf32>
    %cst = arith.constant 0.000000e+00 : f32
    %7 = vector.broadcast %cst : f32 to vector<128x128xf32>
    %8 = arith.cmpf ogt, %6, %7 : vector<128x128xf32>
    %cst_5 = arith.constant 2.000000e-01 : f32
    %9 = vector.broadcast %cst_5 : f32 to vector<128x128xf32>
    %10 = arith.mulf %9, %6 : vector<128x128xf32>
    %11 = arith.select %8, %6, %10 : vector<128x128xi1>, vector<128x128xf32>
    %c0_6 = arith.constant 0 : index
    %c0_7 = arith.constant 0 : index
    %12 = vector.load %arg4[%c0_6, %c0_7] : memref<128x128xf32, #tpu.memory_space<vmem>>, vector<128x128xf32>
    tpu.vector_store %arg4[%c0_6, %c0_7], %11 {strides = array<i32>} : memref<128x128xf32, #tpu.memory_space<vmem>>, vector<128x128xf32>,
    return
  }
  func.func @transform_0(%arg0: i32) -> (i32, i32) {
    %c0_i32 = arith.constant 0 : i32
    %c0_i32_0 = arith.constant 0 : i32
    return %arg0, %c0_i32 : i32, i32
  }
  func.func @transform_1(%arg0: i32) -> (i32, i32) {
    %c0_i32 = arith.constant 0 : i32
    %c0_i32_0 = arith.constant 0 : i32
    %c0_i32_1 = arith.constant 0 : i32
    return %c0_i32, %c0_i32_0 : i32, i32
  }
  func.func @transform_2(%arg0: i32) -> (i32, i32) {
    %c0_i32 = arith.constant 0 : i32
    %c0_i32_0 = arith.constant 0 : i32
    %c0_i32_1 = arith.constant 0 : i32
    return %c0_i32, %c0_i32_0 : i32, i32
  }
  func.func @transform_3(%arg0: i32) -> (i32, i32) {
    %c0_i32 = arith.constant 0 : i32
    %c0_i32_0 = arith.constant 0 : i32
    return %arg0, %c0_i32 : i32, i32
  }
}

module attributes {stable_mosaic.version = 11 : i64} {
  func.func @_matmul_stats_kernel(%arg0: i32, %arg1: memref<32x256xbf16, #tpu.memory_space<vmem>>, %arg2: memref<256x128xbf16, #tpu.memory_space<vmem>>, %arg3: memref<32x128xf32, #tpu.memory_space<vmem>>, %arg4: memref<8x128xf32, #tpu.memory_space<vmem>>) attributes {dimension_semantics = [#tpu.dimension_semantics<parallel>], iteration_bounds = array<i64: 1>, scalar_prefetch = 0 : i64, scratch_operands = 0 : i64, tpu.core_type = #tpu.core_type<tc>, window_params = [{transform_indices = @transform_0, window_bounds = array<i64: 32, 256>}, {pipeline_mode = #tpu.pipeline_mode<synchronous>, transform_indices = @transform_1, window_bounds = array<i64: 256, 128>}, {transform_indices = @transform_2, window_bounds = array<i64: 32, 128>}, {transform_indices = @transform_3, window_bounds = array<i64: 8, 128>}]} {
    %c0 = arith.constant 0 : index
    %c0_0 = arith.constant 0 : index
    %0 = vector.load %arg1[%c0, %c0_0] : memref<32x256xbf16, #tpu.memory_space<vmem>>, vector<32x256xbf16>
    %c0_1 = arith.constant 0 : index
    %c0_2 = arith.constant 0 : index
    %1 = vector.load %arg2[%c0_1, %c0_2] : memref<256x128xbf16, #tpu.memory_space<vmem>>, vector<256x128xbf16>
    %cst = arith.constant dense<0.000000e+00> : vector<32x128xf32>
    %2 = tpu.matmul %0, %1, %cst {dimension_numbers = #tpu.dot_dimension_numbers<[1], [0], [0], [1], [0, 0, 1, 1], [], []>} : vector<32x256xbf16>, vector<256x128xbf16>, vector<32x128xf32> -> vector<32x128xf32>
    %c0_3 = arith.constant 0 : index
    %c0_4 = arith.constant 0 : index
    %3 = vector.load %arg3[%c0_3, %c0_4] : memref<32x128xf32, #tpu.memory_space<vmem>>, vector<32x128xf32>
    tpu.vector_store %arg3[%c0_3, %c0_4], %2 {strides = array<i32>} : memref<32x128xf32, #tpu.memory_space<vmem>>, vector<32x128xf32>,
    %cst_5 = arith.constant dense<0.000000e+00> : vector<128xf32>
    %4 = vector.multi_reduction <add>, %2, %cst_5 [0] : vector<32x128xf32> to vector<128xf32>
    %5 = vector.shape_cast %4 : vector<128xf32> to vector<1x128xf32>
    %6 = arith.mulf %2, %2 : vector<32x128xf32>
    %cst_6 = arith.constant dense<0.000000e+00> : vector<128xf32>
    %7 = vector.multi_reduction <add>, %6, %cst_6 [0] : vector<32x128xf32> to vector<128xf32>
    %8 = vector.shape_cast %7 : vector<128xf32> to vector<1x128xf32>
    %cst_7 = arith.constant 0.000000e+00 : f32
    %9 = vector.broadcast %cst_7 : f32 to vector<6x128xf32>
    %10 = tpu.concatenate %5, %8, %9 in 0 : vector<1x128xf32>, vector<1x128xf32>, vector<6x128xf32> -> vector<8x128xf32>
    %c0_8 = arith.constant 0 : index
    %c0_9 = arith.constant 0 : index
    %11 = vector.load %arg4[%c0_8, %c0_9] : memref<8x128xf32, #tpu.memory_space<vmem>>, vector<8x128xf32>
    tpu.vector_store %arg4[%c0_8, %c0_9], %10 {strides = array<i32>} : memref<8x128xf32, #tpu.memory_space<vmem>>, vector<8x128xf32>,
    return
  }
  func.func @transform_0(%arg0: i32) -> (i32, i32) {
    %c0_i32 = arith.constant 0 : i32
    %c0_i32_0 = arith.constant 0 : i32
    return %arg0, %c0_i32 : i32, i32
  }
  func.func @transform_1(%arg0: i32) -> (i32, i32) {
    %c0_i32 = arith.constant 0 : i32
    %c0_i32_0 = arith.constant 0 : i32
    %c0_i32_1 = arith.constant 0 : i32
    return %c0_i32, %c0_i32_0 : i32, i32
  }
  func.func @transform_2(%arg0: i32) -> (i32, i32) {
    %c0_i32 = arith.constant 0 : i32
    %c0_i32_0 = arith.constant 0 : i32
    return %arg0, %c0_i32 : i32, i32
  }
  func.func @transform_3(%arg0: i32) -> (i32, i32) {
    %c0_i32 = arith.constant 0 : i32
    %c0_i32_0 = arith.constant 0 : i32
    return %arg0, %c0_i32 : i32, i32
  }
}

module attributes {stable_mosaic.version = 11 : i64} {
  func.func @_scale_shift_lrelu_kernel(%arg0: i32, %arg1: memref<32x128xf32, #tpu.memory_space<vmem>>, %arg2: memref<1x128xf32, #tpu.memory_space<vmem>>, %arg3: memref<1x128xf32, #tpu.memory_space<vmem>>, %arg4: memref<32x128xf32, #tpu.memory_space<vmem>>) attributes {dimension_semantics = [#tpu.dimension_semantics<parallel>], iteration_bounds = array<i64: 1>, scalar_prefetch = 0 : i64, scratch_operands = 0 : i64, tpu.core_type = #tpu.core_type<tc>, window_params = [{transform_indices = @transform_0, window_bounds = array<i64: 32, 128>}, {pipeline_mode = #tpu.pipeline_mode<synchronous>, transform_indices = @transform_1, window_bounds = array<i64: 1, 128>}, {pipeline_mode = #tpu.pipeline_mode<synchronous>, transform_indices = @transform_2, window_bounds = array<i64: 1, 128>}, {transform_indices = @transform_3, window_bounds = array<i64: 32, 128>}]} {
    %c0 = arith.constant 0 : index
    %c0_0 = arith.constant 0 : index
    %0 = vector.load %arg1[%c0, %c0_0] : memref<32x128xf32, #tpu.memory_space<vmem>>, vector<32x128xf32>
    %c0_1 = arith.constant 0 : index
    %c0_2 = arith.constant 0 : index
    %1 = vector.load %arg2[%c0_1, %c0_2] : memref<1x128xf32, #tpu.memory_space<vmem>>, vector<1x128xf32>
    %2 = vector.broadcast %1 : vector<1x128xf32> to vector<32x128xf32>
    %3 = arith.mulf %0, %2 : vector<32x128xf32>
    %c0_3 = arith.constant 0 : index
    %c0_4 = arith.constant 0 : index
    %4 = vector.load %arg3[%c0_3, %c0_4] : memref<1x128xf32, #tpu.memory_space<vmem>>, vector<1x128xf32>
    %5 = vector.broadcast %4 : vector<1x128xf32> to vector<32x128xf32>
    %6 = arith.addf %3, %5 : vector<32x128xf32>
    %cst = arith.constant 0.000000e+00 : f32
    %7 = vector.broadcast %cst : f32 to vector<32x128xf32>
    %8 = arith.cmpf ogt, %6, %7 : vector<32x128xf32>
    %cst_5 = arith.constant 2.000000e-01 : f32
    %9 = vector.broadcast %cst_5 : f32 to vector<32x128xf32>
    %10 = arith.mulf %9, %6 : vector<32x128xf32>
    %11 = arith.select %8, %6, %10 : vector<32x128xi1>, vector<32x128xf32>
    %c0_6 = arith.constant 0 : index
    %c0_7 = arith.constant 0 : index
    %12 = vector.load %arg4[%c0_6, %c0_7] : memref<32x128xf32, #tpu.memory_space<vmem>>, vector<32x128xf32>
    tpu.vector_store %arg4[%c0_6, %c0_7], %11 {strides = array<i32>} : memref<32x128xf32, #tpu.memory_space<vmem>>, vector<32x128xf32>,
    return
  }
  func.func @transform_0(%arg0: i32) -> (i32, i32) {
    %c0_i32 = arith.constant 0 : i32
    %c0_i32_0 = arith.constant 0 : i32
    return %arg0, %c0_i32 : i32, i32
  }
  func.func @transform_1(%arg0: i32) -> (i32, i32) {
    %c0_i32 = arith.constant 0 : i32
    %c0_i32_0 = arith.constant 0 : i32
    %c0_i32_1 = arith.constant 0 : i32
    return %c0_i32, %c0_i32_0 : i32, i32
  }
  func.func @transform_2(%arg0: i32) -> (i32, i32) {
    %c0_i32 = arith.constant 0 : i32
    %c0_i32_0 = arith.constant 0 : i32
    %c0_i32_1 = arith.constant 0 : i32
    return %c0_i32, %c0_i32_0 : i32, i32
  }
  func.func @transform_3(%arg0: i32) -> (i32, i32) {
    %c0_i32 = arith.constant 0 : i32
    %c0_i32_0 = arith.constant 0 : i32
    return %arg0, %c0_i32 : i32, i32
  }
}

</mosaic_0001>

<bundles_post_ra>
// kernel: discriminator_forward.5
= control target key start
LH: loop header
LB: loop body
LE: loop exit
PB: predicated region body
PF: predicated region fallthrough
CT: control target
= control target key end

     0   :  { %s863_s9 = smov 0   ;;  %s960_s0 = inlined_call_operand.vmem [shape: bf16[512,128], index: 0, kind: input, shape index: {}]   ;;  %s961_s1 = inlined_call_operand.vmem [shape: bf16[128,128], index: 1, kind: input, shape index: {}]   ;;  %s962_s2 = inlined_call_operand.vmem [shape: f32[512,128], index: 2, kind: output, shape index: {}]  }
   0x1 LB: > { %s685_s10 = sadd.s32 4294967295, %s846_s9   ;;  %p689_p0 = scmp.ge.s32.totalorder %s846_s9, 1  ;;  %s846_s9 = sphi %s863_s9, %s12_s9  }
   0x2   : > { %p113_p1 = scmp.lt.s32.totalorder %s846_s9, 3 }
   0x4   : > { %p114_p2 = pnand %p689_p0, %p113_p1 }
   0x5   : > { %v816_v0 = vld [vmem:[%s961_s1] sm:$0xff] (!%p114_p2)   ;;  %s690_s13 = sshll.u32 (!%p114_p2), %s685_s10, 5  ;;  %v817_v1 = vld [vmem:[%s961_s1 + $0x8] sm:$0xff] (!%p114_p2)   ;;  %v818_v2 = vld [vmem:[%s961_s1 + $0x10] sm:$0xff] (!%p114_p2)  }
   0x6   : > { %117 = sbr.rel (%p114_p2) target bundleno = 284 (0x11c), region = 28  ;;  %p136_p3 = scmp.lt.s32.totalorder (!%p114_p2), %s690_s13, 63  ;;  %744 = vmatprep.subr.bf16.mxu0 (!%p114_p2), %v816_v0  ;;  %792 = vmatprep.subr.bf16.mxu1 (!%p114_p2), %v816_v0  ;;  %v819_v3 = vld [vmem:[%s961_s1 + $0x18] sm:$0xff] (!%p114_p2)   ;;  %v820_v6 = vld [vmem:[%s961_s1 + $0x20] sm:$0xff] (!%p114_p2)   ;;  %v821_v7 = vld [vmem:[%s961_s1 + $0x28] sm:$0xff] (!%p114_p2)  }
   0x7   : > { %745 = vmatpush3.bf16.msra.mxu0 (!%p114_p2), %v816_v0  ;;  %800 = vmatpush3.bf16.msra.mxu1 (!%p114_p2), %v816_v0  ;;  %v822_v8 = vld [vmem:[%s961_s1 + $0x30] sm:$0xff] (!%p114_p2)   ;;  %v823_v9 = vld [vmem:[%s961_s1 + $0x38] sm:$0xff] (!%p114_p2)  }
   0x8   : > { %746 = vmatprep.subr.bf16.mxu0 (!%p114_p2), %v817_v1  ;;  %793 = vmatprep.subr.bf16.mxu1 (!%p114_p2), %v817_v1 }
   0xb   : > { %747 = vmatpush3.bf16.msra.mxu0 (!%p114_p2), %v817_v1  ;;  %801 = vmatpush3.bf16.msra.mxu1 (!%p114_p2), %v817_v1 }
   0xc   : > { %748 = vmatprep.subr.bf16.mxu0 (!%p114_p2), %v818_v2  ;;  %794 = vmatprep.subr.bf16.mxu1 (!%p114_p2), %v818_v2 }
   0xd   : > { %s964_s13 = smov (!%p136_p3, %s690_s13), 63 }
   0xe   : > { %s691_s18 = sshll.u32 %s964_s13, 2  ;;  %s693_s4 = sshll.u32 %s964_s13, 3 }
   0xf   : > { %s886_s21 = scalar_lea.vmem %s960_s0, %s691_s18  ;;  %749 = vmatpush3.bf16.msra.mxu0 %v818_v2  ;;  %802 = vmatpush3.bf16.msra.mxu1 %v818_v2  ;;  %s923_s7 = scalar_lea.vmem %s962_s2, %s693_s4 }
  0x10   : > { %v824_v4 = vld [vmem:[%s886_s21] sm:$0xff]   ;;  %750 = vmatprep.subr.bf16.mxu0 %v819_v3  ;;  %795 = vmatprep.subr.bf16.mxu1 %v819_v3  ;;  %v826_v10 = vld [vmem:[%s886_s21 + $0x8] sm:$0xff]   ;;  %v828_v12 = vld [vmem:[%s886_s21 + $0x10] sm:$0xff]  }
  0x11   : > { %v825_v5 = vld [vmem:[%s886_s21 + $0x40] sm:$0xff]   ;;  %760 = vmatprep.mubr.bf16.mxu0 %v824_v4  ;;  %v827_v11 = vld [vmem:[%s886_s21 + $0x48] sm:$0xff]   ;;  %v829_v13 = vld [vmem:[%s886_s21 + $0x50] sm:$0xff]  }
  0x12   : > { %776 = vmatprep.mubr.bf16.mxu1 %v825_v5  ;;  %v830_v14 = vld [vmem:[%s886_s21 + $0x18] sm:$0xff]   ;;  %v832_v16 = vld [vmem:[%s886_s21 + $0x20] sm:$0xff]   ;;  %v834_v18 = vld [vmem:[%s886_s21 + $0x28] sm:$0xff]  }
  0x13   : > { %751 = vmatpush3.bf16.msra.mxu0 %v819_v3  ;;  %803 = vmatpush3.bf16.msra.mxu1 %v819_v3  ;;  %v831_v15 = vld [vmem:[%s886_s21 + $0x58] sm:$0xff]   ;;  %v833_v17 = vld [vmem:[%s886_s21 + $0x60] sm:$0xff]   ;;  %v835_v19 = vld [vmem:[%s886_s21 + $0x68] sm:$0xff]  }
  0x14   : > { %752 = vmatprep.subr.bf16.mxu0 %v820_v6  ;;  %796 = vmatprep.subr.bf16.mxu1 %v820_v6  ;;  %v836_v20 = vld [vmem:[%s886_s21 + $0x30] sm:$0xff]   ;;  %v838_v22 = vld [vmem:[%s886_s21 + $0x38] sm:$0xff]  }
  0x15   : > { %v837_v21 = vld [vmem:[%s886_s21 + $0x70] sm:$0xff]   ;;  %v839_v23 = vld [vmem:[%s886_s21 + $0x78] sm:$0xff]  }
  0x17   : > { %753 = vmatpush3.bf16.msra.mxu0 %v820_v6  ;;  %804 = vmatpush3.bf16.msra.mxu1 %v820_v6 }
  0x18   : > { %754 = vmatprep.subr.bf16.mxu0 %v821_v7  ;;  %797 = vmatprep.subr.bf16.mxu1 %v821_v7 }
  0x1b   : > { %755 = vmatpush3.bf16.msra.mxu0 %v821_v7  ;;  %805 = vmatpush3.bf16.msra.mxu1 %v821_v7 }
  0x1c   : > { %756 = vmatprep.subr.bf16.mxu0 %v822_v8  ;;  %798 = vmatprep.subr.bf16.mxu1 %v822_v8 }
  0x1f   : > { %757 = vmatpush3.bf16.msra.mxu0 %v822_v8  ;;  %806 = vmatpush3.bf16.msra.mxu1 %v822_v8 }
  0x20   : > { %758 = vmatprep.subr.bf16.mxu0 %v823_v9  ;;  %799 = vmatprep.subr.bf16.mxu1 %v823_v9 }
  0x23   : > { %759 = vmatpush3.bf16.msra.mxu0 %v823_v9  ;;  %807 = vmatpush3.bf16.msra.mxu1 %v823_v9 }
  0x26   : > { %761 = vmatmul.mubr.bf16.vlgmr.msra.gmra.mrb[0].mxu0 %v826_v10  ;;  %777 = vmatmul.mubr.bf16.vlgmr.msra.gmra.mrb[0].mxu1 %v827_v11 }
  0x27   : > { %764 = vmatprep.mubr.bf16.mxu0 %v828_v12  ;;  %780 = vmatprep.mubr.bf16.mxu1 %v829_v13 }
  0x2e   : > { %765 = vmatmul.mubr.bf16.gmra.mrb[4].mxu0 %v830_v14  ;;  %781 = vmatmul.mubr.bf16.gmra.mrb[4].mxu1 %v831_v15 }
  0x2f   : > { %768 = vmatprep.mubr.bf16.mxu0 %v832_v16  ;;  %784 = vmatprep.mubr.bf16.mxu1 %v833_v17 }
  0x36   : > { %769 = vmatmul.mubr.bf16.gmra.mrb[8].mxu0 %v834_v18  ;;  %785 = vmatmul.mubr.bf16.gmra.mrb[8].mxu1 %v835_v19 }
  0x37   : > { %772 = vmatprep.mubr.bf16.mxu0 %v836_v20  ;;  %788 = vmatprep.mubr.bf16.mxu1 %v837_v21 }
  0x3e   : > { %773 = vmatmul.mubr.bf16.gmra.mrb[12].mxu0 %v838_v22  ;;  %789 = vmatmul.mubr.bf16.gmra.mrb[12].mxu1 %v839_v23 }
  0xf9   : > { %v762_v24 = vpop.f32.mrb[0].mxu0  ;;  %v778_v25 = vpop.f32.mrb[0].mxu1 }
  0xfa   : > { %vm503_vm0 = vcmp.gt.f32.partialorder %v762_v24, 0.0  ;;  %v535_v26 = vmul.f32 0.2, %v762_v24  ;;  %vm519_vm1 = vcmp.gt.f32.partialorder %v778_v25, 0.0  ;;  %v551_v27 = vmul.f32 0.2, %v778_v25 }
  0xfb   : > { %v374_v28 = vpop.f32.mrb[1].mxu0  ;;  %v438_v29 = vpop.f32.mrb[1].mxu1 }
  0xfc   : > { %v567_v30 = vsel %vm503_vm0, %v762_v24, %v535_v26  ;;  %v583_v31 = vsel %vm519_vm1, %v778_v25, %v551_v27  ;;  %vm501_vm2 = vcmp.gt.f32.partialorder %v374_v28, 0.0  ;;  %v533_v32 = vmul.f32 0.2, %v374_v28  ;;  %v763_v33 = vpop.f32.mrb[2].mxu0  ;;  %v779_v34 = vpop.f32.mrb[2].mxu1 }
  0xfd   : > { %599 = vst [vmem:[%s923_s7 + $0x10] sm:$0xff] %v567_v30  ;;  %615 = vst [vmem:[%s923_s7 + $0x90] sm:$0xff] %v583_v31  ;;  %vm517_vm3 = vcmp.gt.f32.partialorder %v438_v29, 0.0  ;;  %v549_v35 = vmul.f32 0.2, %v438_v29  ;;  %vm504_vm4 = vcmp.gt.f32.partialorder %v763_v33, 0.0 }
  0xfe   : > { %v536_v36 = vmul.f32 0.2, %v763_v33  ;;  %v565_v37 = vsel %vm501_vm2, %v374_v28, %v533_v32  ;;  %vm520_vm5 = vcmp.gt.f32.partialorder %v779_v34, 0.0  ;;  %v552_v38 = vmul.f32 0.2, %v779_v34  ;;  %v377_v39 = vpop.f32.mrb[3].mxu0 }
  0xff   : > { %v441_v40 = vpop.f32.mrb[3].mxu1  ;;  %597 = vst [vmem:[%s923_s7] sm:$0xff] %v565_v37  ;;  %v581_v41 = vsel %vm517_vm3, %v438_v29, %v549_v35  ;;  %vm502_vm6 = vcmp.gt.f32.partialorder %v377_v39, 0.0  ;;  %v534_v43 = vmul.f32 0.2, %v377_v39 }
 0x100   : > { %v568_v42 = vsel %vm504_vm4, %v763_v33, %v536_v36  ;;  %613 = vst [vmem:[%s923_s7 + $0x80] sm:$0xff] %v581_v41  ;;  %v584_v44 = vsel %vm520_vm5, %v779_v34, %v552_v38  ;;  %vm518_vm7 = vcmp.gt.f32.partialorder %v441_v40, 0.0  ;;  %v550_v45 = vmul.f32 0.2, %v441_v40 }
 0x101   : > { %600 = vst [vmem:[%s923_s7 + $0x18] sm:$0xff] %v568_v42  ;;  %616 = vst [vmem:[%s923_s7 + $0x98] sm:$0xff] %v584_v44  ;;  %v566_v46 = vsel %vm502_vm6, %v377_v39, %v534_v43  ;;  %v766_v47 = vpop.f32.mrb[4].mxu0  ;;  %v782_v48 = vpop.f32.mrb[4].mxu1 }
 0x102   : > { %598 = vst [vmem:[%s923_s7 + $0x8] sm:$0xff] %v566_v46  ;;  %v582_v49 = vsel %vm518_vm7, %v441_v40, %v550_v45  ;;  %vm507_vm8 = vcmp.gt.f32.partialorder %v766_v47, 0.0  ;;  %v539_v50 = vmul.f32 0.2, %v766_v47  ;;  %vm523_vm9 = vcmp.gt.f32.partialorder %v782_v48, 0.0  ;;  %v390_v51 = vpop.f32.mrb[5].mxu0 }
 0x103   : > { %v454_v52 = vpop.f32.mrb[5].mxu1  ;;  %614 = vst [vmem:[%s923_s7 + $0x88] sm:$0xff] %v582_v49  ;;  %v555_v53 = vmul.f32 0.2, %v782_v48  ;;  %vm505_vm10 = vcmp.gt.f32.partialorder %v390_v51, 0.0  ;;  %v767_v57 = vpop.f32.mrb[6].mxu0 }
 0x104   : > { %v537_v54 = vmul.f32 0.2, %v390_v51  ;;  %vm521_vm11 = vcmp.gt.f32.partialorder %v454_v52, 0.0  ;;  %v571_v55 = vsel %vm507_vm8, %v766_v47, %v539_v50  ;;  %v553_v56 = vmul.f32 0.2, %v454_v52  ;;  %v783_v58 = vpop.f32.mrb[6].mxu1 }
 0x105   : > { %603 = vst [vmem:[%s923_s7 + $0x30] sm:$0xff] %v571_v55  ;;  %v587_v59 = vsel %vm523_vm9, %v782_v48, %v555_v53  ;;  %vm508_vm12 = vcmp.gt.f32.partialorder %v767_v57, 0.0  ;;  %v540_v61 = vmul.f32 0.2, %v767_v57  ;;  %v393_v62 = vpop.f32.mrb[7].mxu0  ;;  %v457_v63 = vpop.f32.mrb[7].mxu1 }
 0x106   : > { %v569_v60 = vsel %vm505_vm10, %v390_v51, %v537_v54  ;;  %619 = vst [vmem:[%s923_s7 + $0xb0] sm:$0xff] %v587_v59  ;;  %v585_v0 = vsel %vm521_vm11, %v454_v52, %v553_v56  ;;  %vm524_vm13 = vcmp.gt.f32.partialorder %v783_v58, 0.0  ;;  %v556_v1 = vmul.f32 0.2, %v783_v58 }
 0x107   : > { %601 = vst [vmem:[%s923_s7 + $0x20] sm:$0xff] %v569_v60  ;;  %vm506_vm14 = vcmp.gt.f32.partialorder %v393_v62, 0.0  ;;  %617 = vst [vmem:[%s923_s7 + $0xa0] sm:$0xff] %v585_v0  ;;  %v572_v2 = vsel %vm508_vm12, %v767_v57, %v540_v61  ;;  %v538_v3 = vmul.f32 0.2, %v393_v62  ;;  %vm522_vm15 = vcmp.gt.f32.partialorder %v457_v63, 0.0 }
 0x108   : > { %v554_v4 = vmul.f32 0.2, %v457_v63  ;;  %604 = vst [vmem:[%s923_s7 + $0x38] sm:$0xff] %v572_v2  ;;  %v588_v5 = vsel %vm524_vm13, %v783_v58, %v556_v1 }
 0x109   : > { %620 = vst [vmem:[%s923_s7 + $0xb8] sm:$0xff] %v588_v5  ;;  %v570_v6 = vsel %vm506_vm14, %v393_v62, %v538_v3  ;;  %v770_v8 = vpop.f32.mrb[8].mxu0  ;;  %v786_v9 = vpop.f32.mrb[8].mxu1 }
 0x10a   : > { %v586_v7 = vsel %vm522_vm15, %v457_v63, %v554_v4  ;;  %602 = vst [vmem:[%s923_s7 + $0x28] sm:$0xff] %v570_v6  ;;  %vm511_vm0 = vcmp.gt.f32.partialorder %v770_v8, 0.0  ;;  %v543_v10 = vmul.f32 0.2, %v770_v8  ;;  %vm527_vm1 = vcmp.gt.f32.partialorder %v786_v9, 0.0  ;;  %v406_v12 = vpop.f32.mrb[9].mxu0 }
 0x10b   : > { %618 = vst [vmem:[%s923_s7 + $0xa8] sm:$0xff] %v586_v7  ;;  %v559_v11 = vmul.f32 0.2, %v786_v9  ;;  %v470_v13 = vpop.f32.mrb[9].mxu1  ;;  %vm509_vm2 = vcmp.gt.f32.partialorder %v406_v12, 0.0  ;;  %v771_v17 = vpop.f32.mrb[10].mxu0 }
 0x10c   : > { %v575_v14 = vsel %vm511_vm0, %v770_v8, %v543_v10  ;;  %v541_v16 = vmul.f32 0.2, %v406_v12  ;;  %v787_v18 = vpop.f32.mrb[10].mxu1  ;;  %vm525_vm3 = vcmp.gt.f32.partialorder %v470_v13, 0.0  ;;  %v557_v19 = vmul.f32 0.2, %v470_v13 }
 0x10d   : > { %v591_v15 = vsel %vm527_vm1, %v786_v9, %v559_v11  ;;  %607 = vst [vmem:[%s923_s7 + $0x50] sm:$0xff] %v575_v14  ;;  %vm512_vm4 = vcmp.gt.f32.partialorder %v771_v17, 0.0  ;;  %v544_v20 = vmul.f32 0.2, %v771_v17  ;;  %vm528_vm5 = vcmp.gt.f32.partialorder %v787_v18, 0.0  ;;  %v409_v23 = vpop.f32.mrb[11].mxu0 }
 0x10e   : > { %623 = vst [vmem:[%s923_s7 + $0xd0] sm:$0xff] %v591_v15  ;;  %v573_v21 = vsel %vm509_vm2, %v406_v12, %v541_v16  ;;  %v560_v22 = vmul.f32 0.2, %v787_v18  ;;  %v473_v24 = vpop.f32.mrb[11].mxu1  ;;  %v589_v25 = vsel %vm525_vm3, %v470_v13, %v557_v19  ;;  %vm510_vm6 = vcmp.gt.f32.partialorder %v409_v23, 0.0 }
 0x10f   : > { %605 = vst [vmem:[%s923_s7 + $0x40] sm:$0xff] %v573_v21  ;;  %v576_v26 = vsel %vm512_vm4, %v771_v17, %v544_v20  ;;  %v542_v27 = vmul.f32 0.2, %v409_v23  ;;  %621 = vst [vmem:[%s923_s7 + $0xc0] sm:$0xff] %v589_v25  ;;  %vm526_vm7 = vcmp.gt.f32.partialorder %v473_v24, 0.0 }
 0x110   : > { %608 = vst [vmem:[%s923_s7 + $0x58] sm:$0xff] %v576_v26  ;;  %v592_v28 = vsel %vm528_vm5, %v787_v18, %v560_v22  ;;  %v558_v29 = vmul.f32 0.2, %v473_v24 }
 0x111   : > { %624 = vst [vmem:[%s923_s7 + $0xd8] sm:$0xff] %v592_v28  ;;  %v574_v30 = vsel %vm510_vm6, %v409_v23, %v542_v27  ;;  %v774_v31 = vpop.f32.mrb[12].mxu0  ;;  %v790_v32 = vpop.f32.mrb[12].mxu1 }
 0x112   : > { %606 = vst [vmem:[%s923_s7 + $0x48] sm:$0xff] %v574_v30  ;;  %v590_v33 = vsel %vm526_vm7, %v473_v24, %v558_v29  ;;  %vm515_vm8 = vcmp.gt.f32.partialorder %v774_v31, 0.0  ;;  %v547_v34 = vmul.f32 0.2, %v774_v31  ;;  %vm531_vm9 = vcmp.gt.f32.partialorder %v790_v32, 0.0  ;;  %v422_v35 = vpop.f32.mrb[13].mxu0 }
 0x113   : > { %v486_v36 = vpop.f32.mrb[13].mxu1  ;;  %622 = vst [vmem:[%s923_s7 + $0xc8] sm:$0xff] %v590_v33  ;;  %v563_v37 = vmul.f32 0.2, %v790_v32  ;;  %vm513_vm10 = vcmp.gt.f32.partialorder %v422_v35, 0.0  ;;  %v775_v41 = vpop.f32.mrb[14].mxu0 }
 0x114   : > { %v545_v38 = vmul.f32 0.2, %v422_v35  ;;  %vm529_vm11 = vcmp.gt.f32.partialorder %v486_v36, 0.0  ;;  %v579_v39 = vsel %vm515_vm8, %v774_v31, %v547_v34  ;;  %v561_v40 = vmul.f32 0.2, %v486_v36  ;;  %v791_v42 = vpop.f32.mrb[14].mxu1 }
 0x115   : > { %611 = vst [vmem:[%s923_s7 + $0x70] sm:$0xff] %v579_v39  ;;  %v595_v43 = vsel %vm531_vm9, %v790_v32, %v563_v37  ;;  %vm516_vm12 = vcmp.gt.f32.partialorder %v775_v41, 0.0  ;;  %v548_v45 = vmul.f32 0.2, %v775_v41  ;;  %v425_v46 = vpop.f32.mrb[15].mxu0  ;;  %v489_v47 = vpop.f32.mrb[15].mxu1 }
 0x116   : > { %v577_v44 = vsel %vm513_vm10, %v422_v35, %v545_v38  ;;  %627 = vst [vmem:[%s923_s7 + $0xf0] sm:$0xff] %v595_v43  ;;  %v593_v48 = vsel %vm529_vm11, %v486_v36, %v561_v40  ;;  %vm532_vm13 = vcmp.gt.f32.partialorder %v791_v42, 0.0  ;;  %v564_v49 = vmul.f32 0.2, %v791_v42 }
 0x117   : > { %609 = vst [vmem:[%s923_s7 + $0x60] sm:$0xff] %v577_v44  ;;  %vm514_vm14 = vcmp.gt.f32.partialorder %v425_v46, 0.0  ;;  %625 = vst [vmem:[%s923_s7 + $0xe0] sm:$0xff] %v593_v48  ;;  %v580_v50 = vsel %vm516_vm12, %v775_v41, %v548_v45  ;;  %v546_v51 = vmul.f32 0.2, %v425_v46  ;;  %vm530_vm15 = vcmp.gt.f32.partialorder %v489_v47, 0.0 }
 0x118   : > { %v562_v52 = vmul.f32 0.2, %v489_v47  ;;  %612 = vst [vmem:[%s923_s7 + $0x78] sm:$0xff] %v580_v50  ;;  %v596_v53 = vsel %vm532_vm13, %v791_v42, %v564_v49 }
 0x119   : > { %628 = vst [vmem:[%s923_s7 + $0xf8] sm:$0xff] %v596_v53  ;;  %v578_v54 = vsel %vm514_vm14, %v425_v46, %v546_v51 }
 0x11a   : > { %v594_v55 = vsel %vm530_vm15, %v489_v47, %v562_v52  ;;  %610 = vst [vmem:[%s923_s7 + $0x68] sm:$0xff] %v578_v54 }
 0x11b   : > { %626 = vst [vmem:[%s923_s7 + $0xe8] sm:$0xff] %v594_v55 }
 0x11c PF: > { %s12_s9 = sadd.s32 1, %s846_s9  }
 0x11d   : > { %p9_p4 = scmp.ge.s32.totalorder %s12_s9, 4  }
 0x11f   :  { %11 = sbr.rel (!%p9_p4) target bundleno = 1 (0x1), region = 58 }

// kernel: discriminator_forward.6
= control target key start
LH: loop header
LB: loop body
LE: loop exit
PB: predicated region body
PF: predicated region fallthrough
CT: control target
= control target key end

     0   :  { %vm313_vm0 = vcmask 1040384   ;;  %vm315_vm1 = vcmask 1041408   ;;  %s541_s1 = inlined_call_operand.vmem [shape: bf16[128,128], index: 1, kind: input, shape index: {}]   ;;  %s542_s0 = inlined_call_operand.vmem [shape: bf16[128,128], index: 0, kind: input, shape index: {}]   ;;  %s543_s2 = inlined_call_operand.vmem [shape: f32[128,128], index: 2, kind: output, shape index: {0}]   ;;  %s544_s3 = inlined_call_operand.vmem [shape: f32[8,128], index: 3, kind: output, shape index: {1}]  }
   0x1   :  { %v406_v0 = vld [vmem:[%s541_s1] sm:$0xff]   ;;  %v407_v1 = vld [vmem:[%s541_s1 + $0x8] sm:$0xff]   ;;  %v408_v2 = vld [vmem:[%s541_s1 + $0x10] sm:$0xff]  }
   0x2   :  { %358 = vmatprep.subr.bf16.mxu0 %v406_v0  ;;  %390 = vmatprep.subr.bf16.mxu1 %v406_v0  ;;  %v409_v3 = vld [vmem:[%s541_s1 + $0x18] sm:$0xff]   ;;  %v414_v4 = vld [vmem:[%s542_s0] sm:$0xff]   ;;  %v411_v7 = vld [vmem:[%s541_s1 + $0x28] sm:$0xff]  }
   0x3   :  { %359 = vmatpush3.bf16.msra.mxu0 %v406_v0  ;;  %398 = vmatpush3.bf16.msra.mxu1 %v406_v0  ;;  %v410_v5 = vld [vmem:[%s541_s1 + $0x20] sm:$0xff]   ;;  %v412_v8 = vld [vmem:[%s541_s1 + $0x30] sm:$0xff]   ;;  %v413_v9 = vld [vmem:[%s541_s1 + $0x38] sm:$0xff]  }
   0x4   :  { %360 = vmatprep.subr.bf16.mxu0 %v407_v1  ;;  %391 = vmatprep.subr.bf16.mxu1 %v407_v1  ;;  %v418_v6 = vld [vmem:[%s542_s0 + $0x20] sm:$0xff]   ;;  %v415_v10 = vld [vmem:[%s542_s0 + $0x8] sm:$0xff]   ;;  %v416_v12 = vld [vmem:[%s542_s0 + $0x10] sm:$0xff]  }
   0x5   :  { %374 = vmatprep.mubr.bf16.mxu0 %v414_v4  ;;  %382 = vmatprep.mubr.bf16.mxu1 %v418_v6  ;;  %v419_v11 = vld [vmem:[%s542_s0 + $0x28] sm:$0xff]   ;;  %v420_v13 = vld [vmem:[%s542_s0 + $0x30] sm:$0xff]   ;;  %v417_v14 = vld [vmem:[%s542_s0 + $0x18] sm:$0xff]  }
   0x6   :  { %v421_v15 = vld [vmem:[%s542_s0 + $0x38] sm:$0xff]  }
   0x7   :  { %361 = vmatpush3.bf16.msra.mxu0 %v407_v1  ;;  %399 = vmatpush3.bf16.msra.mxu1 %v407_v1 }
   0x8   :  { %362 = vmatprep.subr.bf16.mxu0 %v408_v2  ;;  %392 = vmatprep.subr.bf16.mxu1 %v408_v2 }
   0xb   :  { %363 = vmatpush3.bf16.msra.mxu0 %v408_v2  ;;  %400 = vmatpush3.bf16.msra.mxu1 %v408_v2 }
   0xc   :  { %364 = vmatprep.subr.bf16.mxu0 %v409_v3  ;;  %393 = vmatprep.subr.bf16.mxu1 %v409_v3 }
   0xf   :  { %365 = vmatpush3.bf16.msra.mxu0 %v409_v3  ;;  %401 = vmatpush3.bf16.msra.mxu1 %v409_v3 }
  0x10   :  { %366 = vmatprep.subr.bf16.mxu0 %v410_v5  ;;  %394 = vmatprep.subr.bf16.mxu1 %v410_v5 }
  0x13   :  { %367 = vmatpush3.bf16.msra.mxu0 %v410_v5  ;;  %402 = vmatpush3.bf16.msra.mxu1 %v410_v5 }
  0x14   :  { %368 = vmatprep.subr.bf16.mxu0 %v411_v7  ;;  %395 = vmatprep.subr.bf16.mxu1 %v411_v7 }
  0x17   :  { %369 = vmatpush3.bf16.msra.mxu0 %v411_v7  ;;  %403 = vmatpush3.bf16.msra.mxu1 %v411_v7 }
  0x18   :  { %370 = vmatprep.subr.bf16.mxu0 %v412_v8  ;;  %396 = vmatprep.subr.bf16.mxu1 %v412_v8 }
  0x1b   :  { %371 = vmatpush3.bf16.msra.mxu0 %v412_v8  ;;  %404 = vmatpush3.bf16.msra.mxu1 %v412_v8 }
  0x1c   :  { %372 = vmatprep.subr.bf16.mxu0 %v413_v9  ;;  %397 = vmatprep.subr.bf16.mxu1 %v413_v9 }
  0x1f   :  { %373 = vmatpush3.bf16.msra.mxu0 %v413_v9  ;;  %405 = vmatpush3.bf16.msra.mxu1 %v413_v9 }
  0x22   :  { %375 = vmatmul.mubr.bf16.vlgmr.msra.gmra.mrb[0].mxu0 %v415_v10  ;;  %383 = vmatmul.mubr.bf16.vlgmr.msra.gmra.mrb[0].mxu1 %v419_v11 }
  0x23   :  { %378 = vmatprep.mubr.bf16.mxu0 %v416_v12  ;;  %386 = vmatprep.mubr.bf16.mxu1 %v420_v13 }
  0x2a   :  { %379 = vmatmul.mubr.bf16.gmra.mrb[4].mxu0 %v417_v14  ;;  %387 = vmatmul.mubr.bf16.gmra.mrb[4].mxu1 %v421_v15 }
  0xf5   :  { %v376_v16 = vpop.f32.mrb[0].mxu0  ;;  %v384_v17 = vpop.f32.mrb[0].mxu1 }
  0xf6   :  { %241 = vst [vmem:[%s543_s2 + $0x10] sm:$0xff] %v376_v16  ;;  %v176_v18 = vpop.f32.mrb[1].mxu0  ;;  %249 = vst [vmem:[%s543_s2 + $0x50] sm:$0xff] %v384_v17  ;;  %v208_v19 = vpop.f32.mrb[1].mxu1  ;;  %v278_v27 = vmul.f32 %v376_v16, %v376_v16  ;;  %v286_v59 = vmul.f32 %v384_v17, %v384_v17 }
  0xf7   :  { %239 = vst [vmem:[%s543_s2] sm:$0xff] %v176_v18  ;;  %v377_v20 = vpop.f32.mrb[2].mxu0  ;;  %247 = vst [vmem:[%s543_s2 + $0x40] sm:$0xff] %v208_v19  ;;  %v385_v21 = vpop.f32.mrb[2].mxu1  ;;  %v276_v24 = vmul.f32 %v176_v18, %v176_v18  ;;  %v284_v53 = vmul.f32 %v208_v19, %v208_v19 }
  0xf8   :  { %242 = vst [vmem:[%s543_s2 + $0x18] sm:$0xff] %v377_v20  ;;  %v179_v22 = vpop.f32.mrb[3].mxu0  ;;  %250 = vst [vmem:[%s543_s2 + $0x58] sm:$0xff] %v385_v21  ;;  %v211_v23 = vpop.f32.mrb[3].mxu1  ;;  %v279_v30 = vmul.f32 %v377_v20, %v377_v20  ;;  %v287_v62 = vmul.f32 %v385_v21, %v385_v21 }
  0xf9   :  { %240 = vst [vmem:[%s543_s2 + $0x8] sm:$0xff] %v179_v22  ;;  %v255_v25 = vadd.f32 %v179_v22, %v176_v18  ;;  %v277_v26 = vmul.f32 %v179_v22, %v179_v22  ;;  %248 = vst [vmem:[%s543_s2 + $0x48] sm:$0xff] %v211_v23  ;;  %v285_v58 = vmul.f32 %v211_v23, %v211_v23 }
  0xfb   :  { %v256_v28 = vadd.f32 %v376_v16, %v255_v25  ;;  %v292_v29 = vadd.f32 %v277_v26, %v276_v24 }
  0xfd   :  { %v293_v31 = vadd.f32 %v292_v29, %v278_v27  ;;  %v380_v32 = vpop.f32.mrb[4].mxu0  ;;  %v257_v33 = vadd.f32 %v377_v20, %v256_v28  ;;  %v388_v34 = vpop.f32.mrb[4].mxu1 }
  0xfe   :  { %245 = vst [vmem:[%s543_s2 + $0x30] sm:$0xff] %v380_v32  ;;  %v192_v35 = vpop.f32.mrb[5].mxu0  ;;  %253 = vst [vmem:[%s543_s2 + $0x70] sm:$0xff] %v388_v34  ;;  %v224_v36 = vpop.f32.mrb[5].mxu1  ;;  %v282_v47 = vmul.f32 %v380_v32, %v380_v32  ;;  %v290_v7 = vmul.f32 %v388_v34, %v388_v34 }
  0xff   :  { %243 = vst [vmem:[%s543_s2 + $0x20] sm:$0xff] %v192_v35  ;;  %v258_v37 = vadd.f32 %v257_v33, %v192_v35  ;;  %v280_v38 = vmul.f32 %v192_v35, %v192_v35  ;;  %v294_v39 = vadd.f32 %v293_v31, %v279_v30  ;;  %v381_v40 = vpop.f32.mrb[6].mxu0  ;;  %251 = vst [vmem:[%s543_s2 + $0x60] sm:$0xff] %v224_v36  ;;  %v389_v41 = vpop.f32.mrb[6].mxu1 }
 0x100   :  { %246 = vst [vmem:[%s543_s2 + $0x38] sm:$0xff] %v381_v40  ;;  %v195_v42 = vpop.f32.mrb[7].mxu0  ;;  %254 = vst [vmem:[%s543_s2 + $0x78] sm:$0xff] %v389_v41  ;;  %v227_v43 = vpop.f32.mrb[7].mxu1  ;;  %v283_v50 = vmul.f32 %v381_v40, %v381_v40  ;;  %v288_v1 = vmul.f32 %v224_v36, %v224_v36  ;;  %v291_v10 = vmul.f32 %v389_v41, %v389_v41 }
 0x101   :  { %v295_v44 = vadd.f32 %v294_v39, %v280_v38  ;;  %244 = vst [vmem:[%s543_s2 + $0x28] sm:$0xff] %v195_v42  ;;  %v259_v45 = vadd.f32 %v258_v37, %v195_v42  ;;  %v281_v46 = vmul.f32 %v195_v42, %v195_v42  ;;  %252 = vst [vmem:[%s543_s2 + $0x68] sm:$0xff] %v227_v43 }
 0x102   :  { %v289_v6 = vmul.f32 %v227_v43, %v227_v43 }
 0x103   :  { %v260_v48 = vadd.f32 %v380_v32, %v259_v45  ;;  %v296_v49 = vadd.f32 %v295_v44, %v281_v46 }
 0x105   :  { %v297_v51 = vadd.f32 %v296_v49, %v282_v47  ;;  %v261_v52 = vadd.f32 %v381_v40, %v260_v48 }
 0x107   :  { %v262_v54 = vadd.f32 %v261_v52, %v208_v19  ;;  %v298_v55 = vadd.f32 %v297_v51, %v283_v50 }
 0x109   :  { %v299_v56 = vadd.f32 %v298_v55, %v284_v53  ;;  %v263_v57 = vadd.f32 %v262_v54, %v211_v23 }
 0x10b   :  { %v264_v60 = vadd.f32 %v384_v17, %v263_v57  ;;  %v300_v61 = vadd.f32 %v299_v56, %v285_v58 }
 0x10d   :  { %v301_v63 = vadd.f32 %v300_v61, %v286_v59  ;;  %v265_v0 = vadd.f32 %v385_v21, %v264_v60 }
 0x10f   :  { %v266_v2 = vadd.f32 %v265_v0, %v224_v36  ;;  %v302_v3 = vadd.f32 %v301_v63, %v287_v62 }
 0x111   :  { %v303_v4 = vadd.f32 %v302_v3, %v288_v1  ;;  %v267_v5 = vadd.f32 %v266_v2, %v227_v43 }
 0x113   :  { %v268_v8 = vadd.f32 %v388_v34, %v267_v5  ;;  %v304_v9 = vadd.f32 %v303_v4, %v289_v6 }
 0x115   :  { %v269_v11 = vadd.f32 %v389_v41, %v268_v8  ;;  %v305_v12 = vadd.f32 %v304_v9, %v290_v7 }
 0x117   :  { %v270_v13 = vrot.slane %v269_v11, 4  ;;  %v306_v14 = vadd.f32 %v305_v12, %v291_v10 }
 0x119   :  { %v271_v15 = vadd.f32 %v270_v13, %v269_v11  ;;  %v307_v16 = vrot.slane %v306_v14, 4 }
 0x11b   :  { %v272_v17 = vrot.slane %v271_v15, 2  ;;  %v308_v18 = vadd.f32 %v307_v16, %v306_v14 }
 0x11d   :  { %v273_v19 = vadd.f32 %v272_v17, %v271_v15  ;;  %v309_v20 = vrot.slane %v308_v18, 2 }
 0x11f   :  { %v274_v21 = vrot.slane %v273_v19, 1  ;;  %v310_v22 = vadd.f32 %v309_v20, %v308_v18 }
 0x121   :  { %v311_v23 = vrot.slane %v310_v22, 1  ;;  %v275_v24 = vadd.f32 %v274_v21, %v273_v19 }
 0x123   :  { %v312_v25 = vadd.f32 %v311_v23, %v310_v22 }
 0x125   :  { %v314_v26 = vsel %vm313_vm0, %v275_v24, %v312_v25 }
 0x126   :  { %v316_v27 = vsel %vm315_vm1, %v314_v26, 0.0 }
 0x127   :  { %317 = vst [vmem:[%s544_s3] sm:$0xff] %v316_v27 }

// kernel: discriminator_forward.7
= control target key start
LH: loop header
LB: loop body
LE: loop exit
PB: predicated region body
PF: predicated region fallthrough
CT: control target
= control target key end

     0   :  { %s305_s0 = inlined_call_operand.vmem [shape: f32[128,128], index: 0, kind: input, shape index: {}]   ;;  %s306_s1 = inlined_call_operand.vmem [shape: f32[1,128], index: 1, kind: input, shape index: {}]   ;;  %s307_s2 = inlined_call_operand.vmem [shape: f32[1,128], index: 2, kind: input, shape index: {}]   ;;  %s308_s3 = inlined_call_operand.vmem [shape: f32[128,128], index: 3, kind: output, shape index: {}]  }
   0x1   :  { %v14_v0 = vld [vmem:[%s305_s0] sm:$0xff]  ;;  %v15_v4 = vld [vmem:[%s305_s0 + $0x8] sm:$0xff]  ;;  %v16_v5 = vld [vmem:[%s305_s0 + $0x10] sm:$0xff] }
   0x2   :  { %v172_v1 = vld [vmem:[%s306_s1] ss:$0 sm:$0xff]  ;;  %v17_v6 = vld [vmem:[%s305_s0 + $0x18] sm:$0xff]  ;;  %v19_v11 = vld [vmem:[%s305_s0 + $0x28] sm:$0xff] }
   0x3   :  { %v177_v2 = vld [vmem:[%s307_s2] ss:$0 sm:$0xff]  ;;  %v37_v3 = vmul.f32 %v172_v1, %v14_v0  ;;  %v38_v7 = vmul.f32 %v172_v1, %v15_v4  ;;  %v39_v8 = vmul.f32 %v172_v1, %v16_v5  ;;  %v40_v9 = vmul.f32 %v172_v1, %v17_v6  ;;  %v20_v12 = vld [vmem:[%s305_s0 + $0x30] sm:$0xff]  ;;  %v21_v17 = vld [vmem:[%s305_s0 + $0x38] sm:$0xff] }
   0x4   :  { %v18_v10 = vld [vmem:[%s305_s0 + $0x20] sm:$0xff]  ;;  %v42_v15 = vmul.f32 %v172_v1, %v19_v11  ;;  %v43_v16 = vmul.f32 %v172_v1, %v20_v12  ;;  %v44_v21 = vmul.f32 %v172_v1, %v21_v17  ;;  %v23_v30 = vld [vmem:[%s305_s0 + $0x48] sm:$0xff]  ;;  %v24_v31 = vld [vmem:[%s305_s0 + $0x50] sm:$0xff] }
   0x5   :  { %v60_v13 = vadd.f32 %v177_v2, %v37_v3  ;;  %v41_v14 = vmul.f32 %v172_v1, %v18_v10  ;;  %v61_v18 = vadd.f32 %v177_v2, %v38_v7  ;;  %v62_v19 = vadd.f32 %v177_v2, %v39_v8  ;;  %v22_v25 = vld [vmem:[%s305_s0 + $0x40] sm:$0xff]  ;;  %v25_v43 = vld [vmem:[%s305_s0 + $0x58] sm:$0xff]  ;;  %v27_v45 = vld [vmem:[%s305_s0 + $0x68] sm:$0xff] }
   0x6   :  { %v63_v20 = vadd.f32 %v177_v2, %v40_v9  ;;  %v65_v24 = vadd.f32 %v177_v2, %v42_v15  ;;  %v66_v37 = vadd.f32 %v177_v2, %v43_v16  ;;  %v67_v38 = vadd.f32 %v177_v2, %v44_v21  ;;  %v26_v44 = vld [vmem:[%s305_s0 + $0x60] sm:$0xff]  ;;  %v28_v56 = vld [vmem:[%s305_s0 + $0x70] sm:$0xff]  ;;  %v29_v4 = vld [vmem:[%s305_s0 + $0x78] sm:$0xff] }
   0x7   :  { %vm76_vm0 = vcmp.gt.f32.partialorder %v60_v13, 0.0  ;;  %v92_v22 = vmul.f32 0.2, %v60_v13  ;;  %v64_v23 = vadd.f32 %v177_v2, %v41_v14  ;;  %vm77_vm1 = vcmp.gt.f32.partialorder %v61_v18, 0.0 }
   0x8   :  { %v93_v26 = vmul.f32 0.2, %v61_v18  ;;  %vm78_vm2 = vcmp.gt.f32.partialorder %v62_v19, 0.0  ;;  %v94_v27 = vmul.f32 0.2, %v62_v19  ;;  %vm79_vm3 = vcmp.gt.f32.partialorder %v63_v20, 0.0 }
   0x9   :  { %v108_v28 = vsel %vm76_vm0, %v60_v13, %v92_v22  ;;  %v95_v29 = vmul.f32 0.2, %v63_v20  ;;  %vm80_vm4 = vcmp.gt.f32.partialorder %v64_v23, 0.0  ;;  %v96_v34 = vmul.f32 0.2, %v64_v23 }
   0xa   :  { %124 = vst [vmem:[%s308_s3] sm:$0xff] %v108_v28  ;;  %v109_v32 = vsel %vm77_vm1, %v61_v18, %v93_v26  ;;  %v110_v33 = vsel %vm78_vm2, %v62_v19, %v94_v27  ;;  %vm81_vm5 = vcmp.gt.f32.partialorder %v65_v24, 0.0  ;;  %v97_v36 = vmul.f32 0.2, %v65_v24 }
   0xb   :  { %125 = vst [vmem:[%s308_s3 + $0x8] sm:$0xff] %v109_v32  ;;  %126 = vst [vmem:[%s308_s3 + $0x10] sm:$0xff] %v110_v33  ;;  %v111_v35 = vsel %vm79_vm3, %v63_v20, %v95_v29  ;;  %v112_v39 = vsel %vm80_vm4, %v64_v23, %v96_v34  ;;  %v45_v40 = vmul.f32 %v172_v1, %v22_v25  ;;  %vm82_vm6 = vcmp.gt.f32.partialorder %v66_v37, 0.0 }
   0xc   :  { %127 = vst [vmem:[%s308_s3 + $0x18] sm:$0xff] %v111_v35  ;;  %v46_v41 = vmul.f32 %v172_v1, %v23_v30  ;;  %v47_v42 = vmul.f32 %v172_v1, %v24_v31  ;;  %128 = vst [vmem:[%s308_s3 + $0x20] sm:$0xff] %v112_v39  ;;  %v113_v46 = vsel %vm81_vm5, %v65_v24, %v97_v36  ;;  %v98_v47 = vmul.f32 0.2, %v66_v37 }
   0xd   :  { %vm83_vm7 = vcmp.gt.f32.partialorder %v67_v38, 0.0  ;;  %129 = vst [vmem:[%s308_s3 + $0x28] sm:$0xff] %v113_v46  ;;  %v99_v48 = vmul.f32 0.2, %v67_v38  ;;  %v68_v49 = vadd.f32 %v177_v2, %v45_v40  ;;  %v48_v53 = vmul.f32 %v172_v1, %v25_v43 }
   0xe   :  { %v69_v50 = vadd.f32 %v177_v2, %v46_v41  ;;  %v70_v51 = vadd.f32 %v177_v2, %v47_v42  ;;  %v114_v52 = vsel %vm82_vm6, %v66_v37, %v98_v47  ;;  %v49_v54 = vmul.f32 %v172_v1, %v26_v44 }
   0xf   :  { %v50_v55 = vmul.f32 %v172_v1, %v27_v45  ;;  %130 = vst [vmem:[%s308_s3 + $0x30] sm:$0xff] %v114_v52  ;;  %v115_v57 = vsel %vm83_vm7, %v67_v38, %v99_v48  ;;  %vm84_vm8 = vcmp.gt.f32.partialorder %v68_v49, 0.0  ;;  %v100_v58 = vmul.f32 0.2, %v68_v49 }
  0x10   :  { %vm85_vm9 = vcmp.gt.f32.partialorder %v69_v50, 0.0  ;;  %131 = vst [vmem:[%s308_s3 + $0x38] sm:$0xff] %v115_v57  ;;  %v101_v59 = vmul.f32 0.2, %v69_v50  ;;  %vm86_vm10 = vcmp.gt.f32.partialorder %v70_v51, 0.0  ;;  %v71_v61 = vadd.f32 %v177_v2, %v48_v53 }
  0x11   :  { %v102_v60 = vmul.f32 0.2, %v70_v51  ;;  %v116_v62 = vsel %vm84_vm8, %v68_v49, %v100_v58  ;;  %v72_v63 = vadd.f32 %v177_v2, %v49_v54  ;;  %v73_v0 = vadd.f32 %v177_v2, %v50_v55 }
  0x12   :  { %v51_v3 = vmul.f32 %v172_v1, %v28_v56  ;;  %132 = vst [vmem:[%s308_s3 + $0x40] sm:$0xff] %v116_v62  ;;  %v117_v5 = vsel %vm85_vm9, %v69_v50, %v101_v59  ;;  %vm87_vm11 = vcmp.gt.f32.partialorder %v71_v61, 0.0  ;;  %v103_v7 = vmul.f32 0.2, %v71_v61 }
  0x13   :  { %v118_v6 = vsel %vm86_vm10, %v70_v51, %v102_v60  ;;  %133 = vst [vmem:[%s308_s3 + $0x48] sm:$0xff] %v117_v5  ;;  %vm88_vm12 = vcmp.gt.f32.partialorder %v72_v63, 0.0  ;;  %v104_v8 = vmul.f32 0.2, %v72_v63  ;;  %vm89_vm13 = vcmp.gt.f32.partialorder %v73_v0, 0.0 }
  0x14   :  { %134 = vst [vmem:[%s308_s3 + $0x50] sm:$0xff] %v118_v6  ;;  %v105_v9 = vmul.f32 0.2, %v73_v0  ;;  %v119_v10 = vsel %vm87_vm11, %v71_v61, %v103_v7  ;;  %v74_v11 = vadd.f32 %v177_v2, %v51_v3  ;;  %v52_v12 = vmul.f32 %v172_v1, %v29_v4 }
  0x15   :  { %135 = vst [vmem:[%s308_s3 + $0x58] sm:$0xff] %v119_v10  ;;  %v120_v13 = vsel %vm88_vm12, %v72_v63, %v104_v8 }
  0x16   :  { %v121_v14 = vsel %vm89_vm13, %v73_v0, %v105_v9  ;;  %136 = vst [vmem:[%s308_s3 + $0x60] sm:$0xff] %v120_v13  ;;  %vm90_vm14 = vcmp.gt.f32.partialorder %v74_v11, 0.0  ;;  %v106_v15 = vmul.f32 0.2, %v74_v11  ;;  %v75_v16 = vadd.f32 %v177_v2, %v52_v12 }
  0x17   :  { %137 = vst [vmem:[%s308_s3 + $0x68] sm:$0xff] %v121_v14 }
  0x18   :  { %v122_v17 = vsel %vm90_vm14, %v74_v11, %v106_v15  ;;  %vm91_vm15 = vcmp.gt.f32.partialorder %v75_v16, 0.0  ;;  %v107_v1 = vmul.f32 0.2, %v75_v16 }
  0x19   :  { %138 = vst [vmem:[%s308_s3 + $0x70] sm:$0xff] %v122_v17 }
  0x1a   :  { %v123_v18 = vsel %vm91_vm15, %v75_v16, %v107_v1 }
  0x1b   :  { %139 = vst [vmem:[%s308_s3 + $0x78] sm:$0xff] %v123_v18 }

// kernel: discriminator_forward.8
= control target key start
LH: loop header
LB: loop body
LE: loop exit
PB: predicated region body
PF: predicated region fallthrough
CT: control target
= control target key end

     0   :  { %vm241_vm0 = vcmask 1040384   ;;  %vm243_vm1 = vcmask 1041408   ;;  %s435_s1 = inlined_call_operand.vmem [shape: bf16[256,128], index: 1, kind: input, shape index: {}]   ;;  %s436_s0 = inlined_call_operand.vmem [shape: bf16[32,256], index: 0, kind: input, shape index: {}]   ;;  %s437_s2 = inlined_call_operand.vmem [shape: f32[32,128], index: 2, kind: output, shape index: {0}]   ;;  %s438_s3 = inlined_call_operand.vmem [shape: f32[8,128], index: 3, kind: output, shape index: {1}]  }
   0x1   :  { %v318_v0 = vld [vmem:[%s435_s1 + $0x40] sm:$0xff]   ;;  %v320_v2 = vld [vmem:[%s435_s1 + $0x48] sm:$0xff]   ;;  %v322_v4 = vld [vmem:[%s435_s1 + $0x50] sm:$0xff]  }
   0x2   :  { %v319_v1 = vld [vmem:[%s435_s1] sm:$0xff]   ;;  %274 = vmatprep.subr.bf16.mxu0 %v318_v0  ;;  %302 = vmatprep.subr.bf16.mxu1 %v318_v0  ;;  %v321_v3 = vld [vmem:[%s435_s1 + $0x8] sm:$0xff]   ;;  %v323_v5 = vld [vmem:[%s435_s1 + $0x10] sm:$0xff]  }
   0x3   :  { %275 = vmatpush3.bf16.msra.mxu0 %v319_v1  ;;  %310 = vmatpush3.bf16.msra.mxu1 %v319_v1  ;;  %v324_v6 = vld [vmem:[%s435_s1 + $0x58] sm:$0xff]   ;;  %v326_v8 = vld [vmem:[%s435_s1 + $0x60] sm:$0xff]   ;;  %v328_v10 = vld [vmem:[%s435_s1 + $0x68] sm:$0xff]  }
   0x4   :  { %276 = vmatprep.subr.bf16.mxu0 %v320_v2  ;;  %303 = vmatprep.subr.bf16.mxu1 %v320_v2  ;;  %v325_v7 = vld [vmem:[%s435_s1 + $0x18] sm:$0xff]   ;;  %v327_v9 = vld [vmem:[%s435_s1 + $0x20] sm:$0xff]   ;;  %v329_v13 = vld [vmem:[%s435_s1 + $0x28] sm:$0xff]  }
   0x5   :  { %v336_v11 = vld [vmem:[%s436_s0 + $0x4] ss:$8 sps:$4 sm:$0xff]   ;;  %v339_v12 = vld [vmem:[%s436_s0 + $0x14] ss:$8 sps:$4 sm:$0xff]   ;;  %v334_v18 = vld [vmem:[%s436_s0] ss:$8 sps:$4 sm:$0xff]  }
   0x6   :  { %v330_v14 = vld [vmem:[%s435_s1 + $0x70] sm:$0xff]   ;;  %198 = vmatprep.mubr.bf16.mxu0 %v336_v11  ;;  %206 = vmatprep.mubr.bf16.mxu1 %v339_v12  ;;  %v332_v16 = vld [vmem:[%s435_s1 + $0x78] sm:$0xff]  }
   0x7   :  { %277 = vmatpush3.bf16.msra.mxu0 %v321_v3  ;;  %311 = vmatpush3.bf16.msra.mxu1 %v321_v3  ;;  %v331_v15 = vld [vmem:[%s435_s1 + $0x30] sm:$0xff]   ;;  %v333_v17 = vld [vmem:[%s435_s1 + $0x38] sm:$0xff]  }
   0x8   :  { %278 = vmatprep.subr.bf16.mxu0 %v322_v4  ;;  %304 = vmatprep.subr.bf16.mxu1 %v322_v4  ;;  %v337_v19 = vld [vmem:[%s436_s0 + $0x10] ss:$8 sps:$4 sm:$0xff]  }
   0xb   :  { %279 = vmatpush3.bf16.msra.mxu0 %v323_v5  ;;  %312 = vmatpush3.bf16.msra.mxu1 %v323_v5 }
   0xc   :  { %280 = vmatprep.subr.bf16.mxu0 %v324_v6  ;;  %305 = vmatprep.subr.bf16.mxu1 %v324_v6 }
   0xf   :  { %281 = vmatpush3.bf16.msra.mxu0 %v325_v7  ;;  %313 = vmatpush3.bf16.msra.mxu1 %v325_v7 }
  0x10   :  { %282 = vmatprep.subr.bf16.mxu0 %v326_v8  ;;  %306 = vmatprep.subr.bf16.mxu1 %v326_v8 }
  0x13   :  { %283 = vmatpush3.bf16.msra.mxu0 %v327_v9  ;;  %314 = vmatpush3.bf16.msra.mxu1 %v327_v9 }
  0x14   :  { %284 = vmatprep.subr.bf16.mxu0 %v328_v10  ;;  %307 = vmatprep.subr.bf16.mxu1 %v328_v10 }
  0x17   :  { %285 = vmatpush3.bf16.msra.mxu0 %v329_v13  ;;  %315 = vmatpush3.bf16.msra.mxu1 %v329_v13 }
  0x18   :  { %286 = vmatprep.subr.bf16.mxu0 %v330_v14  ;;  %308 = vmatprep.subr.bf16.mxu1 %v330_v14 }
  0x1b   :  { %287 = vmatpush3.bf16.msra.mxu0 %v331_v15  ;;  %316 = vmatpush3.bf16.msra.mxu1 %v331_v15 }
  0x1c   :  { %288 = vmatprep.subr.bf16.mxu0 %v332_v16  ;;  %309 = vmatprep.subr.bf16.mxu1 %v332_v16 }
  0x1f   :  { %289 = vmatpush3.bf16.msra.mxu0 %v333_v17  ;;  %317 = vmatpush3.bf16.msra.mxu1 %v333_v17 }
  0x22   :  { %199 = vmatmul.mubr.bf16.vlgmr.msra.gmra.mrb[0].mxu0 %v334_v18  ;;  %207 = vmatmul.mubr.bf16.vlgmr.msra.gmra.mrb[0].mxu1 %v337_v19 }
  0xf5   :  { %v290_v20 = vpop.f32.mrb[0].mxu0  ;;  %v296_v21 = vpop.f32.mrb[0].mxu1 }
  0xf6   :  { %v291_v22 = vpop.f32.mrb[1].mxu0  ;;  %v297_v23 = vpop.f32.mrb[1].mxu1 }
  0xf7   :  { %v292_v24 = vadd.f32 %v291_v22, %v290_v20  ;;  %v293_v25 = vpop.f32.mrb[2].mxu0  ;;  %v298_v26 = vadd.f32 %v297_v23, %v296_v21  ;;  %v299_v27 = vpop.f32.mrb[2].mxu1 }
  0xf8   :  { %v294_v28 = vpop.f32.mrb[3].mxu0  ;;  %v300_v29 = vpop.f32.mrb[3].mxu1 }
  0xf9   :  { %215 = vst [vmem:[%s437_s2] sm:$0xff] %v292_v24  ;;  %217 = vst [vmem:[%s437_s2 + $0x10] sm:$0xff] %v298_v26  ;;  %v295_v30 = vadd.f32 %v294_v28, %v293_v25  ;;  %v301_v31 = vadd.f32 %v300_v29, %v299_v27  ;;  %v228_v32 = vmul.f32 %v292_v24, %v292_v24 }
  0xfa   :  { %v230_v33 = vmul.f32 %v298_v26, %v298_v26 }
  0xfb   :  { %216 = vst [vmem:[%s437_s2 + $0x8] sm:$0xff] %v295_v30  ;;  %v219_v34 = vadd.f32 %v295_v30, %v292_v24  ;;  %v229_v35 = vmul.f32 %v295_v30, %v295_v30  ;;  %218 = vst [vmem:[%s437_s2 + $0x18] sm:$0xff] %v301_v31  ;;  %v231_v39 = vmul.f32 %v301_v31, %v301_v31 }
  0xfd   :  { %v232_v36 = vadd.f32 %v229_v35, %v228_v32  ;;  %v220_v37 = vadd.f32 %v298_v26, %v219_v34 }
  0xff   :  { %v221_v38 = vadd.f32 %v301_v31, %v220_v37  ;;  %v233_v40 = vadd.f32 %v232_v36, %v230_v33 }
 0x101   :  { %v222_v41 = vrot.slane %v221_v38, 4  ;;  %v234_v42 = vadd.f32 %v233_v40, %v231_v39 }
 0x103   :  { %v223_v43 = vadd.f32 %v222_v41, %v221_v38  ;;  %v235_v44 = vrot.slane %v234_v42, 4 }
 0x105   :  { %v224_v45 = vrot.slane %v223_v43, 2  ;;  %v236_v46 = vadd.f32 %v235_v44, %v234_v42 }
 0x107   :  { %v225_v47 = vadd.f32 %v224_v45, %v223_v43  ;;  %v237_v48 = vrot.slane %v236_v46, 2 }
 0x109   :  { %v226_v49 = vrot.slane %v225_v47, 1  ;;  %v238_v50 = vadd.f32 %v237_v48, %v236_v46 }
 0x10b   :  { %v239_v51 = vrot.slane %v238_v50, 1  ;;  %v227_v52 = vadd.f32 %v226_v49, %v225_v47 }
 0x10d   :  { %v240_v53 = vadd.f32 %v239_v51, %v238_v50 }
 0x10f   :  { %v242_v54 = vsel %vm241_vm0, %v227_v52, %v240_v53 }
 0x110   :  { %v244_v55 = vsel %vm243_vm1, %v242_v54, 0.0 }
 0x111   :  { %245 = vst [vmem:[%s438_s3] sm:$0xff] %v244_v55 }

// kernel: discriminator_forward.9
= control target key start
LH: loop header
LB: loop body
LE: loop exit
PB: predicated region body
PF: predicated region fallthrough
CT: control target
= control target key end

     0   :  { %s112_s0 = inlined_call_operand.vmem [shape: f32[32,128], index: 0, kind: input, shape index: {}]   ;;  %s113_s1 = inlined_call_operand.vmem [shape: f32[1,128], index: 1, kind: input, shape index: {}]   ;;  %s114_s2 = inlined_call_operand.vmem [shape: f32[1,128], index: 2, kind: input, shape index: {}]   ;;  %s115_s3 = inlined_call_operand.vmem [shape: f32[32,128], index: 3, kind: output, shape index: {}]  }
   0x1   :  { %v14_v0 = vld [vmem:[%s112_s0] sm:$0xff]  ;;  %v15_v4 = vld [vmem:[%s112_s0 + $0x8] sm:$0xff]  ;;  %v16_v5 = vld [vmem:[%s112_s0 + $0x10] sm:$0xff] }
   0x2   :  { %v60_v1 = vld [vmem:[%s113_s1] ss:$0 sm:$0xff]  ;;  %v17_v6 = vld [vmem:[%s112_s0 + $0x18] sm:$0xff] }
   0x3   :  { %v61_v2 = vld [vmem:[%s114_s2] ss:$0 sm:$0xff]  ;;  %v25_v3 = vmul.f32 %v60_v1, %v14_v0  ;;  %v26_v7 = vmul.f32 %v60_v1, %v15_v4  ;;  %v27_v8 = vmul.f32 %v60_v1, %v16_v5  ;;  %v28_v9 = vmul.f32 %v60_v1, %v17_v6 }
   0x5   :  { %v36_v10 = vadd.f32 %v61_v2, %v25_v3  ;;  %v37_v11 = vadd.f32 %v61_v2, %v26_v7  ;;  %v38_v12 = vadd.f32 %v61_v2, %v27_v8  ;;  %v39_v13 = vadd.f32 %v61_v2, %v28_v9 }
   0x7   :  { %vm40_vm0 = vcmp.gt.f32.partialorder %v36_v10, 0.0  ;;  %v44_v14 = vmul.f32 0.2, %v36_v10  ;;  %vm41_vm1 = vcmp.gt.f32.partialorder %v37_v11, 0.0  ;;  %v45_v15 = vmul.f32 0.2, %v37_v11 }
   0x8   :  { %vm42_vm2 = vcmp.gt.f32.partialorder %v38_v12, 0.0  ;;  %v46_v16 = vmul.f32 0.2, %v38_v12  ;;  %vm43_vm3 = vcmp.gt.f32.partialorder %v39_v13, 0.0  ;;  %v47_v18 = vmul.f32 0.2, %v39_v13 }
   0x9   :  { %v48_v17 = vsel %vm40_vm0, %v36_v10, %v44_v14  ;;  %v49_v19 = vsel %vm41_vm1, %v37_v11, %v45_v15 }
   0xa   :  { %52 = vst [vmem:[%s115_s3] sm:$0xff] %v48_v17  ;;  %v50_v20 = vsel %vm42_vm2, %v38_v12, %v46_v16  ;;  %53 = vst [vmem:[%s115_s3 + $0x8] sm:$0xff] %v49_v19  ;;  %v51_v21 = vsel %vm43_vm3, %v39_v13, %v47_v18 }
   0xb   :  { %54 = vst [vmem:[%s115_s3 + $0x10] sm:$0xff] %v50_v20  ;;  %55 = vst [vmem:[%s115_s3 + $0x18] sm:$0xff] %v51_v21 }

</bundles_post_ra>
